<compile_context>
chip_gen: v7x
topology: tpu7x:2x2x1
jax: 0.10.0
libtpu: 0.0.40
codegen_flags: <defaults>
</compile_context>

<pallas_src>
import functools

import jax
import jax.numpy as jnp
from jax import lax
from jax.experimental import pallas as pl
from jax.experimental.pallas import tpu as pltpu


def _round_up(x, m):
    return ((x + m - 1) // m) * m


def _vmem_capacity_bytes(default=64 << 20):
    """Physical VMEM per TensorCore (v5e/v6e: 128 MiB, v7x: 64 MiB).
    Falls back to the smaller v7x value if the query is unavailable."""
    try:
        info = pltpu.get_tpu_info()
        cap = int(getattr(info, "vmem_capacity_bytes", 0) or 0)
        if cap > 0:
            return cap
    except Exception:
        pass
    return default


# ----------------------------- Pallas kernel ------------------------------ #
def _focal_sum_kernel(x_ref, t_ref, out_ref, acc_ref, *,
                      alpha, gamma, ignore_index, hw, sb, tl, needs_mask):
    """One grid step processes a (C, SB, TL) logits tile and a (SB, TL)
    targets tile of one batch image / pixel group.  Per-pixel focal terms
    accumulate into the sublane+lane dense acc_ref (SB, TL); the per-(image,
    group) partial sum is written once on the group's last pixel tile."""
    g = pl.program_id(1)                           # pixel-group index
    k = pl.program_id(2)                           # pixel-tile index in group

    @pl.when(k == 0)
    def _():
        acc_ref[...] = jnp.zeros_like(acc_ref)

    x = x_ref[...].astype(jnp.float32)             # (C, SB, TL)
    t = t_ref[...].astype(jnp.int32)               # (SB, TL)

    # Softmax statistics over the class axis (axis 0 = third-from-last):
    # each reduce step is a plain elementwise VPU op on dense (SB, TL)
    # slices -- no cross-sublane / cross-lane XLU work in the hot loop.
    m = jnp.max(x, axis=0)                         # (SB, TL)
    d = x - m[None]                                # (C, SB, TL)
    e = jnp.exp(d)                                 # (C, SB, TL)  (EUP)
    sum_exp = jnp.sum(e, axis=0)                   # (SB, TL)

    # Single one-hot mask reused for both target gathers (C is small).
    cls = lax.broadcasted_iota(jnp.int32, x.shape, 0)
    onehot = cls == t[None]                        # (C, SB, TL)
    d_tgt = jnp.sum(jnp.where(onehot, d, 0.0), axis=0)   # = x_tgt - m
    e_tgt = jnp.sum(jnp.where(onehot, e, 0.0), axis=0)   # = exp(x_tgt - m)

    ce = jnp.log(sum_exp) - d_tgt                  # raw CE (garbage where masked)
    # pt = exp(-ce), computed exactly by reusing exp(x - m): no extra EUP exp.
    pt = e_tgt / sum_exp
    q = 1.0 - pt
    if float(gamma).is_integer() and gamma >= 0:
        w = lax.integer_pow(q, int(gamma))         # e.g. q*q for gamma=2
    else:
        w = q ** gamma

    valid = t != ignore_index                      # (SB, TL)
    if needs_mask:
        # Tail / phantom tiles: mask pixels past the logical end of the image.
        # `remaining` is a scalar, so this is one broadcast compare.
        remaining = hw - (g * pl.num_programs(2) + k) * (sb * tl)
        pix = (lax.broadcasted_iota(jnp.int32, (sb, tl), 0) * tl
               + lax.broadcasted_iota(jnp.int32, (sb, tl), 1))
        valid = jnp.logical_and(valid, pix < remaining)

    # The final select also neutralizes any NaN/Inf coming from garbage lanes
    # of partial tiles (ce / pt are only meaningful where `valid`), and makes
    # ignore_index pixels contribute exactly 0, matching the reference.
    acc_ref[...] += jnp.where(valid, alpha * w * ce, 0.0)

    @pl.when(k == pl.num_programs(2) - 1)
    def _():
        out_ref[...] = jnp.sum(acc_ref[...], axis=(0, 1), keepdims=True)


# ------------------------------ JAX wrapper ------------------------------- #
def focal_loss(inputs, targets, *, alpha=0.25, gamma=2.0, ignore_index=255,
               size_average=True, max_tile_pixels=32768, pixel_groups=None,
               vmem_budget_bytes=None):
    """inputs:  (N, C, H, W) float32 / bfloat16 logits (NCHW, like PyTorch).
       targets: (N, H, W) integer class ids (kept in their native dtype).
       Returns (loss, loss_mean) as device scalars (jittable)."""
    N, C, H, W = inputs.shape
    HW = H * W
    P = N * HW            # fl.mean() divides by ALL pixels (incl. ignored)

    if jnp.dtype(targets.dtype).itemsize > 4:      # TPU dislikes 64-bit ints
        targets = targets.astype(jnp.int32)
    in_isz = jnp.dtype(inputs.dtype).itemsize
    t_isz = jnp.dtype(targets.dtype).itemsize

    # ---- generation-aware tile sizing -------------------------------------
    vmem_cap = _vmem_capacity_bytes()
    if vmem_budget_bytes is None:
        vmem_budget_bytes = max(8 << 20, int(vmem_cap * 0.45))
    # Bytes per pixel resident in VMEM: double-buffered logits block, ~4 f32
    # (C, ...) intermediates (f32 cast, exp(x-m), one-hot selects), the f32
    # accumulator and the double-buffered targets block (+ slack).
    per_pixel = 2 * C * in_isz + 4 * C * 4 + 4 + 2 * t_isz + 8
    tile_px = max(128, int(vmem_budget_bytes) // per_pixel)
    tile_px = min(tile_px, int(max_tile_pixels))

    # ---- layout ------------------------------------------------------------
    if HW % 128 == 0:
        # Pixels fill sublanes AND lanes: S rows of 128 pixels (free reshape).
        S, TL = HW // 128, 128
        rows = max(1, tile_px // 128)
        SB = S if rows >= S else min(S, max(8, (rows // 8) * 8))
        x = inputs.reshape(N, C, S, TL)
        t = targets.reshape(N, S, TL)
        n_tiles = pl.cdiv(S, SB)
        pix_axis_last = False
    else:
        # Fallback for HW not a multiple of 128: pixels stay flat on lanes.
        S, SB = 1, 1
        TL = HW if tile_px >= HW else max(128, (tile_px // 128) * 128)
        x = inputs.reshape(N, C, 1, HW)
        t = targets.reshape(N, 1, HW)
        n_tiles = pl.cdiv(HW, TL)
        pix_axis_last = True

    # ---- dual-TensorCore pixel split (helps v7x at small / odd batch) ------
    if pixel_groups is None:
        G = 2 if (N % 2 == 1 and n_tiles >= 2) else 1
    else:
        G = max(1, min(int(pixel_groups), n_tiles))
    PT = pl.cdiv(n_tiles, G)
    needs_mask = (G * PT * SB * TL) != HW
    last_tile = n_tiles - 1

    if G * PT == n_tiles:
        def tile_idx(g, k):
            return g * PT + k
    else:
        # Clamp phantom tiles (G*PT > n_tiles) to the last real tile; their
        # contribution is zeroed by the in-kernel position mask.
        def tile_idx(g, k):
            return jnp.minimum(g * PT + k, last_tile)

    if pix_axis_last:
        x_spec = pl.BlockSpec((pl.Squeezed(), C, 1, TL),
                              lambda n, g, k: (n, 0, 0, tile_idx(g, k)))
        t_spec = pl.BlockSpec((pl.Squeezed(), 1, TL),
                              lambda n, g, k: (n, 0, tile_idx(g, k)))
    else:
        x_spec = pl.BlockSpec((pl.Squeezed(), C, SB, TL),
                              lambda n, g, k: (n, 0, tile_idx(g, k), 0))
        t_spec = pl.BlockSpec((pl.Squeezed(), SB, TL),
                              lambda n, g, k: (n, tile_idx(g, k), 0))

    kernel = functools.partial(
        _focal_sum_kernel,
        alpha=float(alpha), gamma=float(gamma), ignore_index=int(ignore_index),
        hw=HW, sb=SB, tl=TL, needs_mask=bool(needs_mask))

    vmem_limit = int(min(vmem_cap * 0.75, 112 << 20))
    cost = pl.CostEstimate(
        flops=int(N * HW * (8 * C + 16)),
        transcendentals=int(N * HW * (C + 2)),
        bytes_accessed=int(N * C * HW * in_isz + N * HW * t_isz + N * G * 4))

    partials = pl.pallas_call(
        kernel,
        out_shape=jax.ShapeDtypeStruct((N * G, 1, 1), jnp.float32),
        grid_spec=pltpu.PrefetchScalarGridSpec(
            num_scalar_prefetch=0,
            grid=(N, G, PT),
            in_specs=[x_spec, t_spec],
            out_specs=pl.BlockSpec((pl.Squeezed(), 1, 1),
                                   lambda n, g, k: (n * G + g, 0, 0)),
            scratch_shapes=[pltpu.VMEM((SB, TL), jnp.float32)],
        ),
        compiler_params=pltpu.CompilerParams(
            dimension_semantics=("parallel", "parallel", "arbitrary"),
            vmem_limit_bytes=vmem_limit),
        cost_estimate=cost,
    )(x, t)

    loss_sum = jnp.sum(partials)
    # PyTorch .mean() divides by ALL elements (including ignore_index ones).
    loss_mean = loss_sum / jnp.float32(P)
    loss = loss_mean if size_average else loss_sum
    return loss, loss_mean


def focal_loss_torchlike(inputs, targets, **kw):
    """Mirrors the PyTorch module's return: (loss, [mean.item()]).
    Host sync happens here, outside the jitted hot path."""
    loss, loss_mean = focal_loss(inputs, targets, **kw)
    return loss, [float(jax.device_get(loss_mean))]


# ------------------------------ reference --------------------------------- #
def _focal_loss_ref(inputs, targets, *, alpha, gamma, ignore_index):
    N, C, H, W = inputs.shape
    logp = jax.nn.log_softmax(inputs.astype(jnp.float32), axis=1)
    t_clamped = jnp.clip(targets.astype(jnp.int32), 0, C - 1)
    logp_t = jnp.take_along_axis(logp, t_clamped[:, None], axis=1)[:, 0]
    ce = jnp.where(targets != ignore_index, -logp_t, 0.0)
    pt = jnp.exp(-ce)
    fl = alpha * (1.0 - pt) ** gamma * ce
    return fl.mean(), fl.sum()


# -------------------------------- main ------------------------------------ #
if __name__ == "__main__":
    IGNORE = 255
    ALPHA, GAMMA = 0.25, 2.0

    def _make(key, N, C, H, W, dtype):
        k1, k2, k3 = jax.random.split(key, 3)
        logits = jax.random.normal(k1, (N, C, H, W), dtype=jnp.float32).astype(dtype)
        tgt = jax.random.randint(k2, (N, H, W), 0, C, dtype=jnp.int32)
        tgt = jnp.where(jax.random.bernoulli(k3, 0.1, (N, H, W)),
                        jnp.int32(IGNORE), tgt)
        return logits, tgt

    def _close(a, b, rtol=1e-5, atol=1e-5):
        return abs(a - b) <= atol + rtol * abs(b)

    def _check(logits, tgt, **kw):
        ref_mean, ref_sum = _focal_loss_ref(
            logits, tgt, alpha=ALPHA, gamma=GAMMA, ignore_index=IGNORE)
        mean_fn = jax.jit(functools.partial(
            focal_loss, alpha=ALPHA, gamma=GAMMA, ignore_index=IGNORE,
            size_average=True, **kw))
        mean_k, _ = mean_fn(logits, tgt)
        mean_k = float(jax.block_until_ready(mean_k))
        assert _close(mean_k, float(ref_mean)), (mean_k, float(ref_mean))
        sum_fn = jax.jit(functools.partial(
            focal_loss, alpha=ALPHA, gamma=GAMMA, ignore_index=IGNORE,
            size_average=False, **kw))
        sum_k, _ = sum_fn(logits, tgt)
        sum_k = float(jax.block_until_ready(sum_k))
        assert _close(sum_k, float(ref_sum), rtol=1e-5, atol=1e-4), \
            (sum_k, float(ref_sum))
        return ref_mean

    key = jax.random.PRNGKey(0)
    k1, k2, k3 = jax.random.split(key, 3)

    # 1) Main case: NCHW f32, HW % 128 == 0 -> dense (S,128) layout, G=1.
    logits1, tgt1 = _make(k1, 2, 4, 16, 16, jnp.float32)
    ref_mean1 = _check(logits1, tgt1)
    _, mean_list = focal_loss_torchlike(
        logits1, tgt1, alpha=ALPHA, gamma=GAMMA,
        ignore_index=IGNORE, size_average=True)
    assert _close(mean_list[0], float(ref_mean1))

    # 2) Fallback layout: HW not a multiple of 128, bf16 logits, small tiles
    #    -> 4 lane tiles, auto pixel-group split (G=2), lane tail masking.
    logits2, tgt2 = _make(k2, 1, 5, 20, 20, jnp.bfloat16)
    _check(logits2, tgt2, max_tile_pixels=128)

    # 3) Dense layout with row tail + phantom tile: S=18 rows, SB=8 -> 3 tiles,
    #    G=2 groups of 2 -> one clamped phantom tile (must contribute 0).
    logits3, tgt3 = _make(k3, 1, 4, 8, 288, jnp.float32)
    _check(logits3, tgt3, max_tile_pixels=1024)

    print("KERNEL_OK")
</pallas_src>

<mosaic_0001>
module attributes {stable_mosaic.version = 11 : i64} {
  func.func @_focal_sum_kernel(%arg0: i32, %arg1: i32, %arg2: i32, %arg3: memref<1x4x2x128xf32, #tpu.memory_space<vmem>>, %arg4: memref<1x2x128xi32, #tpu.memory_space<vmem>>, %arg5: memref<1x1x1xf32, #tpu.memory_space<vmem>>, %arg6: memref<2x128xf32, #tpu.memory_space<vmem>>) attributes {dimension_semantics = [#tpu.dimension_semantics<parallel>, #tpu.dimension_semantics<parallel>, #tpu.dimension_semantics<arbitrary>], iteration_bounds = array<i64: 2, 1, 1>, scalar_prefetch = 0 : i64, scratch_operands = 1 : i64, tpu.core_type = #tpu.core_type<tc>, window_params = [{transform_indices = @transform_0, window_bounds = array<i64: 1, 4, 2, 128>}, {transform_indices = @transform_1, window_bounds = array<i64: 1, 2, 128>}, {transform_indices = @transform_2, window_bounds = array<i64: 1, 1, 1>}]} {
    %c0_i32 = arith.constant 0 : i32
    %0 = arith.cmpi eq, %arg2, %c0_i32 : i32
    %1 = arith.extui %0 : i1 to i32
    %c0_i32_0 = arith.constant 0 : i32
    %2 = arith.cmpi ne, %1, %c0_i32_0 : i32
    scf.if %2 {
      %cst_21 = arith.constant 0.000000e+00 : f32
      %42 = vector.broadcast %cst_21 : f32 to vector<2x128xf32>
      %c0_22 = arith.constant 0 : index
      %c0_23 = arith.constant 0 : index
      %43 = vector.load %arg6[%c0_22, %c0_23] : memref<2x128xf32, #tpu.memory_space<vmem>>, vector<2x128xf32>
      tpu.vector_store %arg6[%c0_22, %c0_23], %42 {strides = array<i32>} : memref<2x128xf32, #tpu.memory_space<vmem>>, vector<2x128xf32>,
    } else {
    }
    %c0 = arith.constant 0 : index
    %c0_1 = arith.constant 0 : index
    %c0_2 = arith.constant 0 : index
    %c0_3 = arith.constant 0 : index
    %3 = vector.load %arg3[%c0, %c0_1, %c0_2, %c0_3] : memref<1x4x2x128xf32, #tpu.memory_space<vmem>>, vector<1x4x2x128xf32>
    %4 = vector.shape_cast %3 : vector<1x4x2x128xf32> to vector<4x2x128xf32>
    %c0_4 = arith.constant 0 : index
    %c0_5 = arith.constant 0 : index
    %c0_6 = arith.constant 0 : index
    %5 = vector.load %arg4[%c0_4, %c0_5, %c0_6] : memref<1x2x128xi32, #tpu.memory_space<vmem>>, vector<1x2x128xi32>
    %6 = vector.shape_cast %5 : vector<1x2x128xi32> to vector<2x128xi32>
    %cst = arith.constant dense<0xFF800000> : vector<2x128xf32>
    %7 = vector.multi_reduction <maximumf>, %4, %cst [0] : vector<4x2x128xf32> to vector<2x128xf32>
    %8 = vector.shape_cast %7 : vector<2x128xf32> to vector<1x2x128xf32>
    %9 = vector.broadcast %8 : vector<1x2x128xf32> to vector<4x2x128xf32>
    %10 = arith.subf %4, %9 : vector<4x2x128xf32>
    %11 = math.exp %10 : vector<4x2x128xf32>
    %cst_7 = arith.constant dense<0.000000e+00> : vector<2x128xf32>
    %12 = vector.multi_reduction <add>, %11, %cst_7 [0] : vector<4x2x128xf32> to vector<2x128xf32>
    %13 = tpu.iota {dimensions = array<i32: 0>} : vector<4x2x128xi32>
    %14 = vector.shape_cast %6 : vector<2x128xi32> to vector<1x2x128xi32>
    %15 = vector.broadcast %14 : vector<1x2x128xi32> to vector<4x2x128xi32>
    %16 = arith.cmpi eq, %13, %15 : vector<4x2x128xi32>
    %cst_8 = arith.constant 0.000000e+00 : f32
    %17 = vector.broadcast %cst_8 : f32 to vector<4x2x128xf32>
    %18 = arith.select %16, %10, %17 : vector<4x2x128xi1>, vector<4x2x128xf32>
    %cst_9 = arith.constant dense<0.000000e+00> : vector<2x128xf32>
    %19 = vector.multi_reduction <add>, %18, %cst_9 [0] : vector<4x2x128xf32> to vector<2x128xf32>
    %cst_10 = arith.constant 0.000000e+00 : f32
    %20 = vector.broadcast %cst_10 : f32 to vector<4x2x128xf32>
    %21 = arith.select %16, %11, %20 : vector<4x2x128xi1>, vector<4x2x128xf32>
    %cst_11 = arith.constant dense<0.000000e+00> : vector<2x128xf32>
    %22 = vector.multi_reduction <add>, %21, %cst_11 [0] : vector<4x2x128xf32> to vector<2x128xf32>
    %23 = math.log %12 : vector<2x128xf32>
    %24 = arith.subf %23, %19 : vector<2x128xf32>
    %25 = arith.divf %22, %12 : vector<2x128xf32>
    %cst_12 = arith.constant 1.000000e+00 : f32
    %26 = vector.broadcast %cst_12 : f32 to vector<2x128xf32>
    %27 = arith.subf %26, %25 : vector<2x128xf32>
    %28 = arith.mulf %27, %27 : vector<2x128xf32>
    %c255_i32 = arith.constant 255 : i32
    %29 = vector.broadcast %c255_i32 : i32 to vector<2x128xi32>
    %30 = arith.cmpi ne, %6, %29 : vector<2x128xi32>
    %c0_13 = arith.constant 0 : index
    %c0_14 = arith.constant 0 : index
    %31 = vector.load %arg6[%c0_13, %c0_14] : memref<2x128xf32, #tpu.memory_space<vmem>>, vector<2x128xf32>
    %cst_15 = arith.constant 2.500000e-01 : f32
    %32 = vector.broadcast %cst_15 : f32 to vector<2x128xf32>
    %33 = arith.mulf %32, %28 : vector<2x128xf32>
    %34 = arith.mulf %33, %24 : vector<2x128xf32>
    %cst_16 = arith.constant 0.000000e+00 : f32
    %35 = vector.broadcast %cst_16 : f32 to vector<2x128xf32>
    %36 = arith.select %30, %34, %35 : vector<2x128xi1>, vector<2x128xf32>
    %37 = arith.addf %31, %36 : vector<2x128xf32>
    %c0_17 = arith.constant 0 : index
    %c0_18 = arith.constant 0 : index
    %38 = vector.load %arg6[%c0_17, %c0_18] : memref<2x128xf32, #tpu.memory_space<vmem>>, vector<2x128xf32>
    tpu.vector_store %arg6[%c0_17, %c0_18], %37 {strides = array<i32>} : memref<2x128xf32, #tpu.memory_space<vmem>>, vector<2x128xf32>,
    %c0_i32_19 = arith.constant 0 : i32
    %39 = arith.cmpi eq, %arg2, %c0_i32_19 : i32
    %40 = arith.extui %39 : i1 to i32
    %c0_i32_20 = arith.constant 0 : i32
    %41 = arith.cmpi ne, %40, %c0_i32_20 : i32
    scf.if %41 {
      %c0_21 = arith.constant 0 : index
      %c0_22 = arith.constant 0 : index
      %42 = vector.load %arg6[%c0_21, %c0_22] : memref<2x128xf32, #tpu.memory_space<vmem>>, vector<2x128xf32>
      %43 = vector.shape_cast %42 : vector<2x128xf32> to vector<1x2x128xf32>
      %cst_23 = arith.constant dense<0.000000e+00> : vector<1xf32>
      %44 = vector.multi_reduction <add>, %43, %cst_23 [1, 2] : vector<1x2x128xf32> to vector<1xf32>
      %45 = vector.shape_cast %44 : vector<1xf32> to vector<1x1x1xf32>
      %46 = vector.extract %45[0, 0, 0] : f32 from vector<1x1x1xf32>
      %47 = vector.broadcast %46 : f32 to vector<1x1xf32>
      %c0_24 = arith.constant 0 : index
      %c0_25 = arith.constant 0 : index
      %c0_26 = arith.constant 0 : index
      %48 = vector.load %arg5[%c0_24, %c0_25, %c0_26] : memref<1x1x1xf32, #tpu.memory_space<vmem>>, vector<1x1x1xf32>
      %49 = vector.shape_cast %48 : vector<1x1x1xf32> to vector<1x1xf32>
      %50 = vector.shape_cast %47 : vector<1x1xf32> to vector<1x1x1xf32>
      tpu.vector_store %arg5[%c0_24, %c0_25, %c0_26], %50 {strides = array<i32>} : memref<1x1x1xf32, #tpu.memory_space<vmem>>, vector<1x1x1xf32>,
    } else {
    }
    return
  }
  func.func @transform_0(%arg0: i32, %arg1: i32, %arg2: i32) -> (i32, i32, i32, i32) {
    %c1_i32 = arith.constant 1 : i32
    %0 = arith.muli %arg1, %c1_i32 : i32
    %1 = arith.addi %0, %arg2 : i32
    %c0_i32 = arith.constant 0 : i32
    %c0_i32_0 = arith.constant 0 : i32
    %c0_i32_1 = arith.constant 0 : i32
    return %arg0, %c0_i32, %1, %c0_i32_0 : i32, i32, i32, i32
  }
  func.func @transform_1(%arg0: i32, %arg1: i32, %arg2: i32) -> (i32, i32, i32) {
    %c1_i32 = arith.constant 1 : i32
    %0 = arith.muli %arg1, %c1_i32 : i32
    %1 = arith.addi %0, %arg2 : i32
    %c0_i32 = arith.constant 0 : i32
    %c0_i32_0 = arith.constant 0 : i32
    return %arg0, %1, %c0_i32 : i32, i32, i32
  }
  func.func @transform_2(%arg0: i32, %arg1: i32, %arg2: i32) -> (i32, i32, i32) {
    %c1_i32 = arith.constant 1 : i32
    %0 = arith.muli %arg0, %c1_i32 : i32
    %1 = arith.addi %0, %arg1 : i32
    %c0_i32 = arith.constant 0 : i32
    %c0_i32_0 = arith.constant 0 : i32
    %c0_i32_1 = arith.constant 0 : i32
    return %1, %c0_i32, %c0_i32_0 : i32, i32, i32
  }
}

</mosaic_0001>

<bundles_post_ra>
// kernel: focal_loss.1
= control target key start
LH: loop header
LB: loop body
LE: loop exit
PB: predicated region body
PF: predicated region fallthrough
CT: control target
= control target key end

     0   :  { %s484_s9 = smov 0   ;;  %s486_s10 = smov 0   ;;  %s546_s0 = inlined_call_operand.vmem [shape: f32[2,4,2,128], index: 0, kind: input, shape index: {}]   ;;  %s547_s1 = inlined_call_operand.vmem [shape: s32[2,2,128], index: 1, kind: input, shape index: {}]   ;;  %s548_s2 = inlined_call_operand.vmem [shape: f32[2,1,1], index: 2, kind: output, shape index: {}]  }
   0x1   :  { %s488_s11 = smov 0  }
   0x2 LB: > { %s31_s12 = sadd.s32 1, %s462_s10  ;;  %p398_p0 = scmp.ge.s32.totalorder %s466_s11, 1  ;;  %s466_s11 = sphi %s488_s11, %s12_s11   ;;  %s462_s10 = sphi %s486_s10, %s550_s10   ;;  %s458_s9 = sphi %s484_s9, %s549_s9  }
   0x3   : > { %p33_p1 = scmp.ge.s32.totalorder %s31_s12, 2  ;;  %p160_p2 = scmp.lt.s32.totalorder %s466_s11, 3 }
   0x5   : > { %s552_s12 = smov (%p33_p1, %s31_s12), 0  ;;  %p161_p3 = pnand %p398_p0, %p160_p2 }
   0x6   : > { %p194_p4 = scmp.lt.s32.totalorder (!%p161_p3), %s458_s9, 1  ;;  %v468_v0 = vmov (!%p161_p3), 0.0   ;;  %vm227_vm0 = vcmask (!%p161_p3), 1041408   ;;  %vm309_vm6 = vcmask (!%p161_p3), 0  }
   0x7   : > { %164 = sbr.rel (%p161_p3) target bundleno = 287 (0x11f), region = 28  ;;  %221 = vst [vmem:[#allocation2] sm:$0x3] (!%p161_p3), %v468_v0 }
   0xe   : > { %s554_s9 = smov (!%p194_p4, %s458_s9), 1  ;;  %v288_v62 = vld [vmem:[#allocation2] sm:$0x3] }
   0xf   : > { %s404_s13 = sshll.u32 %s554_s9, 3  ;;  %s401_s17 = sshll.u32 %s554_s9, 1 }
  0x10   : > { %s201_s16 = scalar_lea.vmem %s546_s0, %s404_s13  ;;  %s210_s20 = scalar_lea.vmem %s547_s1, %s401_s17 }
  0x11   : > { %v222_v1 = vld [vmem:[%s201_s16] sm:$0x3]  ;;  %v223_v2 = vld [vmem:[%s201_s16 + $0x2] sm:$0x3]  ;;  %v224_v3 = vld [vmem:[%s201_s16 + $0x4] sm:$0x3]  ;;  %s215_s23 = scalar_lea.vmem %s548_s2, %s554_s9 }
  0x12   : > { %v225_v4 = vld [vmem:[%s201_s16 + $0x6] sm:$0x3]  ;;  %v228_v5 = vsel %vm227_vm0, %v222_v1, -inf  ;;  %v229_v6 = vsel %vm227_vm0, %v223_v2, -inf  ;;  %v230_v7 = vsel %vm227_vm0, %v224_v3, -inf }
  0x13   : > { %v231_v8 = vsel %vm227_vm0, %v225_v4, -inf  ;;  %v232_v9 = vmax.f32 %v228_v5, %v229_v6  ;;  %v226_v20 = vld [vmem:[%s210_s20] sm:$0x3] }
  0x14   : > { %v233_v10 = vmax.f32 %v230_v7, %v231_v8  ;;  %vm254_vm1 = vcmp.eq.s32.totalorder %v226_v20, 0  ;;  %vm255_vm2 = vcmp.eq.s32.totalorder %v226_v20, 1  ;;  %vm256_vm3 = vcmp.eq.s32.totalorder %v226_v20, 2 }
  0x15   : > { %vm257_vm4 = vcmp.eq.s32.totalorder %v226_v20, 3  ;;  %vm287_vm5 = vcmp.ne.s32.totalorder %v226_v20, 255 }
  0x16   : > { %v234_v11 = vmax.f32 %v232_v9, %v233_v10 }
  0x18   : > { %v235_v12 = vsub.f32 %v222_v1, %v234_v11  ;;  %v236_v13 = vsub.f32 %v223_v2, %v234_v11  ;;  %v237_v14 = vsub.f32 %v224_v3, %v234_v11  ;;  %v238_v15 = vsub.f32 %v225_v4, %v234_v11 }
  0x1a   : > { %v239_v16 = vmul.f32 1.442695, %v235_v12  ;;  %v241_v17 = vmul.f32 1.442695, %v236_v13  ;;  %v243_v18 = vmul.f32 1.442695, %v237_v14 }
  0x1b   : > { %v245_v19 = vmul.f32 1.442695, %v238_v15  ;;  %v258_v36 = vsel %vm254_vm1, %v235_v12, 0.0  ;;  %v259_v37 = vsel %vm255_vm2, %v236_v13, 0.0  ;;  %v260_v43 = vsel %vm256_vm3, %v237_v14, 0.0 }
  0x1c   : > { %432 = vpow2.f32 %v239_v16  ;;  %v262_v40 = vsel %vm227_vm0, %v258_v36, 0.0  ;;  %v263_v41 = vsel %vm227_vm0, %v259_v37, 0.0  ;;  %v265_v47 = vsel %vm227_vm0, %v260_v43, 0.0 }
  0x1d   : > { %434 = vpow2.f32 %v241_v17  ;;  %v264_v45 = vadd.f32 %v263_v41, %v262_v40  ;;  %v261_v49 = vsel %vm257_vm4, %v238_v15, 0.0 }
  0x1e   : > { %436 = vpow2.f32 %v243_v18  ;;  %v267_v52 = vsel %vm227_vm0, %v261_v49, 0.0 }
  0x1f   : > { %438 = vpow2.f32 %v245_v19  ;;  %v266_v50 = vadd.f32 %v265_v47, %v264_v45 }
  0x21   : > { %v268_v55 = vadd.f32 %v267_v52, %v266_v50 }
  0x26   : > { %v433_v21 = vpop.eup %432 }
  0x27   : > { %v435_v22 = vpop.eup %434  ;;  %v247_v23 = vsel %vm227_vm0, %v433_v21, 0.0  ;;  %v269_v29 = vsel %vm254_vm1, %v433_v21, 0.0 }
  0x28   : > { %v437_v24 = vpop.eup %436  ;;  %v248_v25 = vsel %vm227_vm0, %v435_v22, 0.0  ;;  %v270_v30 = vsel %vm255_vm2, %v435_v22, 0.0  ;;  %v273_v33 = vsel %vm227_vm0, %v269_v29, 0.0 }
  0x29   : > { %v439_v26 = vpop.eup %438  ;;  %v249_v27 = vadd.f32 %v248_v25, %v247_v23  ;;  %v250_v28 = vsel %vm227_vm0, %v437_v24, 0.0  ;;  %v274_v34 = vsel %vm227_vm0, %v270_v30, 0.0  ;;  %v271_v38 = vsel %vm256_vm3, %v437_v24, 0.0 }
  0x2a   : > { %v252_v31 = vsel %vm227_vm0, %v439_v26, 0.0  ;;  %v275_v39 = vadd.f32 %v274_v34, %v273_v33  ;;  %v276_v42 = vsel %vm227_vm0, %v271_v38, 0.0  ;;  %v272_v44 = vsel %vm257_vm4, %v439_v26, 0.0 }
  0x2b   : > { %v251_v32 = vadd.f32 %v250_v28, %v249_v27  ;;  %v278_v48 = vsel %vm227_vm0, %v272_v44, 0.0 }
  0x2c   : > { %v277_v46 = vadd.f32 %v276_v42, %v275_v39 }
  0x2d   : > { %v253_v35 = vadd.f32 %v252_v31, %v251_v32 }
  0x2e   : > { %v279_v51 = vadd.f32 %v278_v48, %v277_v46 }
  0x2f   : > { %440 = vlog2.f32 %v253_v35 }
  0x30   : > { %442 = vrcp.f32 %v253_v35 }
  0x39   : > { %v441_v53 = vpop.eup %440 }
  0x3a   : > { %v443_v54 = vpop.eup %442  ;;  %v281_v56 = vmul.f32 0.6931472, %v441_v53 }
  0x3b   : > { %v284_v57 = vmul.f32 %v443_v54, %v279_v51 }
  0x3c   : > { %v282_v59 = vsub.f32 %v281_v56, %v268_v55 }
  0x3d   : > { %v285_v58 = vsub.f32 1.0, %v284_v57 }
  0x3f   : > { %v286_v60 = vmul.f32 %v285_v58, %v285_v58 }
  0x41   : > { %v289_v61 = vmul.f32 0.25, %v286_v60 }
  0x43   : > { %v290_v63 = vmul.f32 %v289_v61, %v282_v59 }
  0x45   : > { %v291_v0 = vsel %vm287_vm5, %v290_v63, 0.0 }
  0x46   : > { %v292_v1 = vadd.f32 %v291_v0, %v288_v62 }
  0x48   : > { %293 = vst [vmem:[#allocation2] sm:$0x3] %v292_v1 }
  0x4f   : > { %v297_v2 = vld [vmem:[#allocation2] sm:$0x3] }
  0x50   : > { %v298_v3 = vsel %vm227_vm0, %v297_v2, 0.0 }
  0x51   : > { %299 = vadd.xlane.f32.xlu0 %v298_v3 }
  0xde   : > { %v300_v4 = vpop.xlane.xlu0 %299 }
  0xdf   : > { %v301_v5 = vrot.slane %v300_v4, 4 }
  0xe1   : > { %v302_v6 = vadd.f32 %v301_v5, %v300_v4 }
  0xe3   : > { %v303_v7 = vrot.slane %v302_v6, 2 }
  0xe5   : > { %v304_v8 = vadd.f32 %v303_v7, %v302_v6 }
  0xe7   : > { %v305_v9 = vrot.slane %v304_v8, 1 }
  0xe9   : > { %v306_v10 = vadd.f32 %v305_v9, %v304_v8 }
  0xeb   : > { %405 = vpush %v306_v10 }
 0x11c   : > { %s406_s24 = spop %405 }
 0x11d   : > { %v308_v11 = vstv %s406_s24 }
 0x11e   : > { %310 = vst.msk [vmem:[%s215_s23] sm:$0x1] %vm309_vm6, %v308_v11 }
 0x11f PF: > { %s12_s11 = sadd.s32 1, %s466_s11   ;;  %s549_s9 = smov %s462_s10 }
 0x120   : > { %p9_p5 = scmp.ge.s32.totalorder %s12_s11, 4   ;;  %s550_s10 = smov %s552_s12 }
 0x122   :  { %11 = sbr.rel (!%p9_p5) target bundleno = 2 (0x2), region = 69 }

</bundles_post_ra>
